<compile_context>
chip_gen: v5e
topology: v5e:2x2
jax: 0.10.0
libtpu: 0.0.40
codegen_flags: <defaults>
</compile_context>

<pallas_src>
import jax
import jax.numpy as jnp
from jax.experimental import pallas as pl
from jax.experimental.pallas import tpu as pltpu

LN_EPS = 1e-5  # nn.LayerNorm default


def residual_add(fn, x, params=(), *, tile_rows=256, cost_estimate=None):
    """out = fn(x) + x, fused in one tiled Pallas kernel.

    fn:     row-local JAX fn, fn(x_tile_f32, *param_arrays) -> (TM, E) f32
    x:      (B, N, E) (or (M, E)) activations, any float dtype (f32 / bf16)
    params: tuple of >=2-D parameter arrays, kept VMEM-resident every step
    """
    orig_shape = x.shape
    E = orig_shape[-1]
    x2 = x.reshape(-1, E)
    M = x2.shape[0]

    # Rows per tile: multiple of 8 (sublanes), capped so fn's f32 intermediates
    # plus double-buffered input/output tiles fit VMEM on v5e/v6e/v7x alike.
    if M <= tile_rows:
        tm = M                              # full extent -> no (8,128) constraint
    else:
        tm = max(8, (tile_rows // 8) * 8)
    grid = (pl.cdiv(M, tm),)

    def kernel(x_ref, *rest):
        o_ref = rest[-1]
        p_refs = rest[:-1]
        xt = x_ref[...].astype(jnp.float32)            # upcast once after load
        yt = fn(xt, *[p[...] for p in p_refs])         # the wrapped sub-block
        o_ref[...] = (yt + xt).astype(o_ref.dtype)     # the residual add (x += res)

    in_specs = [pl.BlockSpec((tm, E), lambda i: (i, 0))]
    for p in params:
        in_specs.append(pl.BlockSpec(p.shape, lambda i, nd=p.ndim: (0,) * nd))

    out = pl.pallas_call(
        kernel,
        out_shape=jax.ShapeDtypeStruct((M, E), x.dtype),
        grid=grid,
        in_specs=in_specs,
        out_specs=pl.BlockSpec((tm, E), lambda i: (i, 0)),
        compiler_params=pltpu.CompilerParams(
            dimension_semantics=("parallel",),      # row tiles are independent
            vmem_limit_bytes=32 * 1024 * 1024,
        ),
        cost_estimate=cost_estimate,
    )(x2, *params)
    return out.reshape(orig_shape)


def make_prenorm_ffn(eps=LN_EPS):
    """fn = LayerNorm(E) -> Linear(E,H) -> GELU -> Linear(H,E): the ViT block
    that ResidualAdd wraps.  params = (gamma(1,E), beta(1,E), w1(E,H), b1(1,H),
    w2(H,E), b2(1,E)).
    """
    # TODO(synk): nn.Dropout inside the wrapped Sequential is eval-mode identity; omitted.
    def fn(x, gamma, beta, w1, b1, w2, b2):
        mu = jnp.mean(x, axis=-1, keepdims=True)
        var = jnp.mean((x - mu) ** 2, axis=-1, keepdims=True)   # biased, as in PyTorch
        h = (x - mu) * jax.lax.rsqrt(var + eps) * gamma + beta
        h = jnp.dot(h, w1, preferred_element_type=jnp.float32) + b1
        # tanh-approx GELU (EUP-friendly); PyTorch nn.GELU default is erf-exact.
        h = jax.nn.gelu(h, approximate=True)
        h = jnp.dot(h, w2, preferred_element_type=jnp.float32) + b2
        return h
    return fn


def reference(fn, x, params):
    """Pure-JAX ResidualAdd: fn(x) + x on the flattened tokens."""
    E = x.shape[-1]
    x2 = x.reshape(-1, E).astype(jnp.float32)
    return (fn(x2, *params) + x2).astype(x.dtype).reshape(x.shape)


if __name__ == "__main__":
    # Small shapes consistent with the ViT module: batch=2, seq(n)=8, emb_size=32.
    B, N, E = 2, 8, 32
    H = 4 * E  # forward_expansion = 4

    key = jax.random.PRNGKey(0)
    kx, k1, k2, k3, k4 = jax.random.split(key, 5)

    x = jax.random.normal(kx, (B, N, E), dtype=jnp.float32)
    gamma = jnp.ones((1, E), jnp.float32)           # LayerNorm default init
    beta = jnp.zeros((1, E), jnp.float32)
    w1 = jax.random.normal(k1, (E, H), jnp.float32) * 0.02
    b1 = jax.random.normal(k2, (1, H), jnp.float32) * 0.02
    w2 = jax.random.normal(k3, (H, E), jnp.float32) * 0.02
    b2 = jax.random.normal(k4, (1, E), jnp.float32) * 0.02

    params = (gamma, beta, w1, b1, w2, b2)
    fn = make_prenorm_ffn()

    M = B * N
    ce = pl.CostEstimate(
        flops=4 * M * E * H,                       # two matmuls
        transcendentals=M * H,                     # gelu tanh per element
        bytes_accessed=2 * x.size * x.dtype.itemsize
        + sum(int(p.size) * p.dtype.itemsize for p in params),
    )

    out = residual_add(fn, x, params, cost_estimate=ce)
    jax.block_until_ready(out)

    ref = reference(fn, x, params)
    assert out.shape == x.shape
    assert jnp.allclose(out, ref, atol=1e-4, rtol=1e-4), "mismatch vs reference"

    print("KERNEL_OK")
</pallas_src>

<mosaic_0001>
module attributes {stable_mosaic.version = 11 : i64} {
  func.func @kernel(%arg0: i32, %arg1: memref<16x32xf32, #tpu.memory_space<vmem>>, %arg2: memref<1x32xf32, #tpu.memory_space<vmem>>, %arg3: memref<1x32xf32, #tpu.memory_space<vmem>>, %arg4: memref<32x128xf32, #tpu.memory_space<vmem>>, %arg5: memref<1x128xf32, #tpu.memory_space<vmem>>, %arg6: memref<128x32xf32, #tpu.memory_space<vmem>>, %arg7: memref<1x32xf32, #tpu.memory_space<vmem>>, %arg8: memref<16x32xf32, #tpu.memory_space<vmem>>) attributes {dimension_semantics = [#tpu.dimension_semantics<parallel>], iteration_bounds = array<i64: 1>, scalar_prefetch = 0 : i64, scratch_operands = 0 : i64, tpu.core_type = #tpu.core_type<tc>, window_params = [{transform_indices = @transform_0, window_bounds = array<i64: 16, 32>}, {pipeline_mode = #tpu.pipeline_mode<synchronous>, transform_indices = @transform_1, window_bounds = array<i64: 1, 32>}, {pipeline_mode = #tpu.pipeline_mode<synchronous>, transform_indices = @transform_2, window_bounds = array<i64: 1, 32>}, {pipeline_mode = #tpu.pipeline_mode<synchronous>, transform_indices = @transform_3, window_bounds = array<i64: 32, 128>}, {pipeline_mode = #tpu.pipeline_mode<synchronous>, transform_indices = @transform_4, window_bounds = array<i64: 1, 128>}, {pipeline_mode = #tpu.pipeline_mode<synchronous>, transform_indices = @transform_5, window_bounds = array<i64: 128, 32>}, {pipeline_mode = #tpu.pipeline_mode<synchronous>, transform_indices = @transform_6, window_bounds = array<i64: 1, 32>}, {transform_indices = @transform_7, window_bounds = array<i64: 16, 32>}]} {
    %c0 = arith.constant 0 : index
    %c0_0 = arith.constant 0 : index
    %0 = vector.load %arg1[%c0, %c0_0] : memref<16x32xf32, #tpu.memory_space<vmem>>, vector<16x32xf32>
    %c0_1 = arith.constant 0 : index
    %c0_2 = arith.constant 0 : index
    %1 = vector.load %arg2[%c0_1, %c0_2] : memref<1x32xf32, #tpu.memory_space<vmem>>, vector<1x32xf32>
    %c0_3 = arith.constant 0 : index
    %c0_4 = arith.constant 0 : index
    %2 = vector.load %arg3[%c0_3, %c0_4] : memref<1x32xf32, #tpu.memory_space<vmem>>, vector<1x32xf32>
    %c0_5 = arith.constant 0 : index
    %c0_6 = arith.constant 0 : index
    %3 = vector.load %arg4[%c0_5, %c0_6] : memref<32x128xf32, #tpu.memory_space<vmem>>, vector<32x128xf32>
    %c0_7 = arith.constant 0 : index
    %c0_8 = arith.constant 0 : index
    %4 = vector.load %arg5[%c0_7, %c0_8] : memref<1x128xf32, #tpu.memory_space<vmem>>, vector<1x128xf32>
    %c0_9 = arith.constant 0 : index
    %c0_10 = arith.constant 0 : index
    %5 = vector.load %arg6[%c0_9, %c0_10] : memref<128x32xf32, #tpu.memory_space<vmem>>, vector<128x32xf32>
    %c0_11 = arith.constant 0 : index
    %c0_12 = arith.constant 0 : index
    %6 = vector.load %arg7[%c0_11, %c0_12] : memref<1x32xf32, #tpu.memory_space<vmem>>, vector<1x32xf32>
    %cst = arith.constant dense<0.000000e+00> : vector<16xf32>
    %7 = vector.multi_reduction <add>, %0, %cst [1] : vector<16x32xf32> to vector<16xf32>
    %8 = vector.shape_cast %7 : vector<16xf32> to vector<16x1xf32>
    %cst_13 = arith.constant 3.200000e+01 : f32
    %9 = vector.broadcast %cst_13 : f32 to vector<16x1xf32>
    %10 = arith.divf %8, %9 : vector<16x1xf32>
    %11 = vector.broadcast %10 : vector<16x1xf32> to vector<16x32xf32>
    %12 = arith.subf %0, %11 : vector<16x32xf32>
    %13 = arith.mulf %12, %12 : vector<16x32xf32>
    %cst_14 = arith.constant dense<0.000000e+00> : vector<16xf32>
    %14 = vector.multi_reduction <add>, %13, %cst_14 [1] : vector<16x32xf32> to vector<16xf32>
    %15 = vector.shape_cast %14 : vector<16xf32> to vector<16x1xf32>
    %cst_15 = arith.constant 3.200000e+01 : f32
    %16 = vector.broadcast %cst_15 : f32 to vector<16x1xf32>
    %17 = arith.divf %15, %16 : vector<16x1xf32>
    %18 = vector.broadcast %10 : vector<16x1xf32> to vector<16x32xf32>
    %19 = arith.subf %0, %18 : vector<16x32xf32>
    %cst_16 = arith.constant 9.99999974E-6 : f32
    %20 = vector.broadcast %cst_16 : f32 to vector<16x1xf32>
    %21 = arith.addf %17, %20 : vector<16x1xf32>
    %22 = math.rsqrt %21 : vector<16x1xf32>
    %23 = vector.broadcast %22 : vector<16x1xf32> to vector<16x32xf32>
    %24 = arith.mulf %19, %23 : vector<16x32xf32>
    %25 = vector.broadcast %1 : vector<1x32xf32> to vector<16x32xf32>
    %26 = arith.mulf %24, %25 : vector<16x32xf32>
    %27 = vector.broadcast %2 : vector<1x32xf32> to vector<16x32xf32>
    %28 = arith.addf %26, %27 : vector<16x32xf32>
    %cst_17 = arith.constant dense<0.000000e+00> : vector<16x128xf32>
    %29 = tpu.matmul %28, %3, %cst_17 {dimension_numbers = #tpu.dot_dimension_numbers<[1], [0], [0], [1], [0, 0, 1, 1], [], []>} : vector<16x32xf32>, vector<32x128xf32>, vector<16x128xf32> -> vector<16x128xf32>
    %30 = vector.broadcast %4 : vector<1x128xf32> to vector<16x128xf32>
    %31 = arith.addf %29, %30 : vector<16x128xf32>
    %32 = arith.mulf %31, %31 : vector<16x128xf32>
    %33 = arith.mulf %31, %32 : vector<16x128xf32>
    %cst_18 = arith.constant 4.471500e-02 : f32
    %34 = vector.broadcast %cst_18 : f32 to vector<16x128xf32>
    %35 = arith.mulf %34, %33 : vector<16x128xf32>
    %36 = arith.addf %31, %35 : vector<16x128xf32>
    %cst_19 = arith.constant 0.797884583 : f32
    %37 = vector.broadcast %cst_19 : f32 to vector<16x128xf32>
    %38 = arith.mulf %37, %36 : vector<16x128xf32>
    %39 = math.tanh %38 : vector<16x128xf32>
    %cst_20 = arith.constant 1.000000e+00 : f32
    %40 = vector.broadcast %cst_20 : f32 to vector<16x128xf32>
    %41 = arith.addf %40, %39 : vector<16x128xf32>
    %cst_21 = arith.constant 5.000000e-01 : f32
    %42 = vector.broadcast %cst_21 : f32 to vector<16x128xf32>
    %43 = arith.mulf %42, %41 : vector<16x128xf32>
    %44 = arith.mulf %31, %43 : vector<16x128xf32>
    %cst_22 = arith.constant dense<0.000000e+00> : vector<16x32xf32>
    %45 = tpu.matmul %44, %5, %cst_22 {dimension_numbers = #tpu.dot_dimension_numbers<[1], [0], [0], [1], [0, 0, 1, 1], [], []>} : vector<16x128xf32>, vector<128x32xf32>, vector<16x32xf32> -> vector<16x32xf32>
    %46 = vector.broadcast %6 : vector<1x32xf32> to vector<16x32xf32>
    %47 = arith.addf %45, %46 : vector<16x32xf32>
    %48 = arith.addf %47, %0 : vector<16x32xf32>
    %c0_23 = arith.constant 0 : index
    %c0_24 = arith.constant 0 : index
    %49 = vector.load %arg8[%c0_23, %c0_24] : memref<16x32xf32, #tpu.memory_space<vmem>>, vector<16x32xf32>
    tpu.vector_store %arg8[%c0_23, %c0_24], %48 {strides = array<i32>} : memref<16x32xf32, #tpu.memory_space<vmem>>, vector<16x32xf32>,
    return
  }
  func.func @transform_0(%arg0: i32) -> (i32, i32) {
    %c0_i32 = arith.constant 0 : i32
    %c0_i32_0 = arith.constant 0 : i32
    return %arg0, %c0_i32 : i32, i32
  }
  func.func @transform_1(%arg0: i32) -> (i32, i32) {
    %c0_i32 = arith.constant 0 : i32
    %c0_i32_0 = arith.constant 0 : i32
    %c0_i32_1 = arith.constant 0 : i32
    return %c0_i32, %c0_i32_0 : i32, i32
  }
  func.func @transform_2(%arg0: i32) -> (i32, i32) {
    %c0_i32 = arith.constant 0 : i32
    %c0_i32_0 = arith.constant 0 : i32
    %c0_i32_1 = arith.constant 0 : i32
    return %c0_i32, %c0_i32_0 : i32, i32
  }
  func.func @transform_3(%arg0: i32) -> (i32, i32) {
    %c0_i32 = arith.constant 0 : i32
    %c0_i32_0 = arith.constant 0 : i32
    %c0_i32_1 = arith.constant 0 : i32
    return %c0_i32, %c0_i32_0 : i32, i32
  }
  func.func @transform_4(%arg0: i32) -> (i32, i32) {
    %c0_i32 = arith.constant 0 : i32
    %c0_i32_0 = arith.constant 0 : i32
    %c0_i32_1 = arith.constant 0 : i32
    return %c0_i32, %c0_i32_0 : i32, i32
  }
  func.func @transform_5(%arg0: i32) -> (i32, i32) {
    %c0_i32 = arith.constant 0 : i32
    %c0_i32_0 = arith.constant 0 : i32
    %c0_i32_1 = arith.constant 0 : i32
    return %c0_i32, %c0_i32_0 : i32, i32
  }
  func.func @transform_6(%arg0: i32) -> (i32, i32) {
    %c0_i32 = arith.constant 0 : i32
    %c0_i32_0 = arith.constant 0 : i32
    %c0_i32_1 = arith.constant 0 : i32
    return %c0_i32, %c0_i32_0 : i32, i32
  }
  func.func @transform_7(%arg0: i32) -> (i32, i32) {
    %c0_i32 = arith.constant 0 : i32
    %c0_i32_0 = arith.constant 0 : i32
    return %arg0, %c0_i32 : i32, i32
  }
}

</mosaic_0001>

<bundles_post_ra>
// kernel: tpu_custom_call.1
= control target key start
LH: loop header
LB: loop body
LE: loop exit
PB: predicated region body
PF: predicated region fallthrough
CT: control target
= control target key end

     0   :  { %vm53_vm0 = vcmask 261120   ;;  %s418_s0 = inlined_call_operand.vmem [shape: f32[16,32], index: 0, kind: input, shape index: {}]   ;;  %s419_s1 = inlined_call_operand.vmem [shape: f32[1,32], index: 1, kind: input, shape index: {}]   ;;  %s420_s2 = inlined_call_operand.vmem [shape: f32[1,32], index: 2, kind: input, shape index: {}]   ;;  %s421_s3 = inlined_call_operand.vmem [shape: f32[32,128], index: 3, kind: input, shape index: {}]   ;;  %s422_s4 = inlined_call_operand.vmem [shape: f32[1,128], index: 4, kind: input, shape index: {}]   ;;  %s423_s5 = inlined_call_operand.vmem [shape: f32[128,32], index: 5, kind: input, shape index: {}]   ;;  %s424_s6 = inlined_call_operand.vmem [shape: f32[1,32], index: 6, kind: input, shape index: {}]   ;;  %s425_s7 = inlined_call_operand.hbm [shape: f32[16,32], index: 7, kind: output, shape index: {}]  }
   0x1   :  { %v322_v0 = vld [vmem:[%s418_s0] sm:$0xff] }
   0x2   :  { %v54_v1 = vsel %vm53_vm0, %v322_v0, 0.0 }
   0x3   :  { %55 = vadd.xlane.f32.xlu0 %v54_v1 }
   0x4   :  { %12 = vsyncpa [#allocation3], 0  ;;  %v329_v2 = vld [vmem:[%s418_s0 + $0x8] sm:$0xff]  ;;  %v275_v4 = vmov 32.0   ;;  %v34_v21 = vld [vmem:[%s421_s3 + $0x18] sm:$0xff]  ;;  %s276_s21 = smov [#allocation2]  }
   0x5   :  { %v57_v3 = vsel %vm53_vm0, %v329_v2, 0.0  ;;  %239 = vrcp.f32 %v275_v4  ;;  %136 = vmatpush.msra.mxu0 %v34_v21  ;;  %v33_v22 = vld [vmem:[%s421_s3 + $0x10] sm:$0xff]  ;;  %v32_v23 = vld [vmem:[%s421_s3 + $0x8] sm:$0xff]  ;;  %v31_v24 = vld [vmem:[%s421_s3] sm:$0xff]  ;;  %s201_s24 = sshll.u32 %s425_s7, 4  ;;  %s278_s25 = smov 8   ;;  %s202_s24 = int_to_ptr.hbm [resolvable:$true] %s201_s24 }
   0x6   :  { %v51_v28 = vld [vmem:[%s423_s5 + $0x78] sm:$0xff]  ;;  %v50_v29 = vld [vmem:[%s423_s5 + $0x70] sm:$0xff]  ;;  %v49_v30 = vld [vmem:[%s423_s5 + $0x68] sm:$0xff] }
   0x7   :  { %137 = vmatpush.msra.mxu0 %v33_v22  ;;  %168 = vmatpush.msra.mxu1 %v51_v28  ;;  %v235_v42 = vld [vmem:[%s419_s1] ss:$0 sm:$0xff]  ;;  %v47_v57 = vld [vmem:[%s423_s5 + $0x58] sm:$0xff]  ;;  %v46_v58 = vld [vmem:[%s423_s5 + $0x50] sm:$0xff] }
   0x8   :  { %215 = vmatpush.msra.mxu2 %v51_v28  ;;  %v236_v46 = vld [vmem:[%s420_s2] ss:$0 sm:$0xff]  ;;  %v45_v59 = vld [vmem:[%s423_s5 + $0x48] sm:$0xff]  ;;  %v43_v61 = vld [vmem:[%s423_s5 + $0x38] sm:$0xff]  ;;  %s199_s2 = sshll.u32 %s276_s21, 4  ;;  %s200_s2 = int_to_ptr.vmem [resolvable:$true] %s199_s2 }
   0x9   :  { %138 = vmatpush.msra.mxu0 %v32_v23  ;;  %169 = vmatpush.msra.mxu1 %v50_v29  ;;  %v48_v56 = vld [vmem:[%s423_s5 + $0x60] sm:$0xff]  ;;  %v42_v62 = vld [vmem:[%s423_s5 + $0x30] sm:$0xff]  ;;  %v41_v63 = vld [vmem:[%s423_s5 + $0x28] sm:$0xff] }
   0xa   :  { %216 = vmatpush.msra.mxu2 %v50_v29  ;;  %v44_v60 = vld [vmem:[%s423_s5 + $0x40] sm:$0xff]  ;;  %v38_v4 = vld [vmem:[%s423_s5 + $0x10] sm:$0xff] }
   0xb   :  { %58 = vadd.xlane.f32.xlu0 %v57_v3  ;;  %v240_v5 = vpop.eup %239  ;;  %139 = vmatpush.msra.mxu0 %v31_v24  ;;  %v40_v1 = vld [vmem:[%s423_s5 + $0x20] sm:$0xff]  ;;  %v39_v3 = vld [vmem:[%s423_s5 + $0x18] sm:$0xff] }
   0xc   :  { %v61_v6 = vmul.f32 32.0, %v240_v5  ;;  %vm65_vm1 = vweird.f32 %v240_v5  ;;  %170 = vmatpush.msra.mxu1 %v49_v30  ;;  %217 = vmatpush.msra.mxu2 %v49_v30  ;;  %v238_v30 = vld [vmem:[%s424_s6] ss:$0 sm:$0xff]  ;;  %s277_s6 = smov 128  }
   0xe   :  { %v62_v7 = vsub.f32 1.0, %v61_v6  ;;  %171 = vmatpush.msra.mxu1 %v48_v56  ;;  %218 = vmatpush.msra.mxu2 %v48_v56  ;;  %v36_v6 = vld [vmem:[%s423_s5] sm:$0xff] }
  0x10   :  { %v63_v8 = vmul.f32 %v240_v5, %v62_v7  ;;  %172 = vmatpush.msra.mxu1 %v47_v57  ;;  %219 = vmatpush.msra.mxu2 %v47_v57  ;;  %v237_v7 = vld [vmem:[%s422_s4] ss:$0 sm:$0xff] }
  0x12   :  { %v64_v9 = vadd.f32 %v240_v5, %v63_v8  ;;  %173 = vmatpush.msra.mxu1 %v46_v58  ;;  %220 = vmatpush.msra.mxu2 %v46_v58 }
  0x14   :  { %v66_v10 = vsel %vm65_vm1, %v240_v5, %v64_v9  ;;  %174 = vmatpush.msra.mxu1 %v45_v59  ;;  %221 = vmatpush.msra.mxu2 %v45_v59  ;;  %v37_v5 = vld [vmem:[%s423_s5 + $0x8] sm:$0xff] }
  0x16   :  { %175 = vmatpush.msra.mxu1 %v44_v60  ;;  %222 = vmatpush.msra.mxu2 %v44_v60 }
  0x18   :  { %176 = vmatpush.msra.mxu1 %v43_v61  ;;  %223 = vmatpush.msra.mxu2 %v43_v61 }
  0x1a   :  { %177 = vmatpush.msra.mxu1 %v42_v62  ;;  %224 = vmatpush.msra.mxu2 %v42_v62 }
  0x1c   :  { %178 = vmatpush.msra.mxu1 %v41_v63  ;;  %225 = vmatpush.msra.mxu2 %v41_v63 }
  0x1e   :  { %179 = vmatpush.msra.mxu1 %v40_v1  ;;  %226 = vmatpush.msra.mxu2 %v40_v1 }
  0x20   :  { %180 = vmatpush.msra.mxu1 %v39_v3  ;;  %227 = vmatpush.msra.mxu2 %v39_v3 }
  0x22   :  { %181 = vmatpush.msra.mxu1 %v38_v4  ;;  %228 = vmatpush.msra.mxu2 %v38_v4 }
  0x24   :  { %182 = vmatpush.msra.mxu1 %v37_v5  ;;  %229 = vmatpush.msra.mxu2 %v37_v5 }
  0x26   :  { %183 = vmatpush.msra.mxu1 %v36_v6  ;;  %230 = vmatpush.msra.mxu2 %v36_v6 }
  0x76   :  { %v56_v11 = vpop.xlane.xlu0 %55 }
  0x77   :  { %v67_v12 = vmul.f32 %v66_v10, %v56_v11 }
  0x79   :  { %v69_v13 = vsub.f32 %v322_v0, %v67_v12 }
  0x7b   :  { %v71_v14 = vmul.f32 %v69_v13, %v69_v13 }
  0x7d   :  { %v73_v15 = vsel %vm53_vm0, %v71_v14, 0.0 }
  0x7e   :  { %74 = vadd.xlane.f32.xlu1 %v73_v15  ;;  %v59_v16 = vpop.xlane.xlu0 %58 }
  0x7f   :  { %v68_v17 = vmul.f32 %v66_v10, %v59_v16 }
  0x81   :  { %v70_v18 = vsub.f32 %v329_v2, %v68_v17 }
  0x83   :  { %v72_v19 = vmul.f32 %v70_v18, %v70_v18 }
  0x85   :  { %v76_v20 = vsel %vm53_vm0, %v72_v19, 0.0 }
  0x86   :  { %77 = vadd.xlane.f32.xlu1 %v76_v20 }
  0xf1   :  { %v75_v25 = vpop.xlane.xlu1 %74 }
  0xf2   :  { %v79_v26 = vmul.f32 %v75_v25, %v66_v10 }
  0xf4   :  { %v81_v27 = vadd.f32 1e-05, %v79_v26 }
  0xf6   :  { %241 = vrsqrt.f32 %v81_v27  ;;  %vm89_vm3 = vweird.f32 %v81_v27 }
  0xf9   :  { %v78_v31 = vpop.xlane.xlu1 %77 }
  0xfa   :  { %v80_v32 = vmul.f32 %v78_v31, %v66_v10 }
  0xfc   :  { %v242_v33 = vpop.eup %241  ;;  %v82_v34 = vadd.f32 1e-05, %v80_v32 }
  0xfd   :  { %v84_v35 = vmul.f32 %v242_v33, %v81_v27  ;;  %vm90_vm2 = vweird.f32 %v242_v33 }
  0xfe   :  { %243 = vrsqrt.f32 %v82_v34  ;;  %vm91_vm4 = vmor %vm89_vm3, %vm90_vm2  ;;  %vm99_vm6 = vweird.f32 %v82_v34 }
  0xff   :  { %v85_v36 = vmul.f32 %v242_v33, %v84_v35 }
 0x101   :  { %v86_v37 = vmul.f32 0.5, %v85_v36 }
 0x103   :  { %v87_v38 = vsub.f32 1.5, %v86_v37 }
 0x104   :  { %v244_v39 = vpop.eup %243 }
 0x105   :  { %v88_v40 = vmul.f32 %v242_v33, %v87_v38  ;;  %v94_v41 = vmul.f32 %v244_v39, %v82_v34  ;;  %vm100_vm5 = vweird.f32 %v244_v39 }
 0x106   :  { %vm101_vm7 = vmor %vm99_vm6, %vm100_vm5 }
 0x107   :  { %v92_v43 = vsel %vm91_vm4, %v242_v33, %v88_v40  ;;  %v95_v44 = vmul.f32 %v244_v39, %v94_v41 }
 0x108   :  { %v103_v45 = vmul.f32 %v92_v43, %v69_v13 }
 0x109   :  { %v96_v47 = vmul.f32 0.5, %v95_v44 }
 0x10a   :  { %v108_v48 = vmul.f32 %v235_v42, %v103_v45 }
 0x10b   :  { %v97_v49 = vsub.f32 1.5, %v96_v47 }
 0x10c   :  { %v113_v50 = vadd.f32 %v236_v46, %v108_v48 }
 0x10d   :  { %v98_v51 = vmul.f32 %v244_v39, %v97_v49 }
 0x10e   :  { %213 = vmatmul.msk.f32.vlgmr.msra.gmra.mxu0 %vm53_vm0, %v113_v50 }
 0x10f   :  { %v102_v52 = vsel %vm101_vm7, %v244_v39, %v98_v51 }
 0x110   :  { %v104_v53 = vmul.f32 %v102_v52, %v70_v18 }
 0x112   :  { %v109_v54 = vmul.f32 %v235_v42, %v104_v53 }
 0x114   :  { %v114_v55 = vadd.f32 %v236_v46, %v109_v54 }
 0x116   :  { %214 = vmatmul.msk.f32.gmra.mxu0 %vm53_vm0, %v114_v55 }
 0x18b   :  { %v141_v8 = vpop.f32.mrf.mxu0 }
 0x18c   :  { %v142_v9 = vadd.f32 %v237_v7, %v141_v8 }
 0x18e   :  { %v147_v10 = vmul.f32 %v142_v9, %v142_v9 }
 0x190   :  { %v149_v11 = vmul.f32 %v147_v10, %v142_v9 }
 0x192   :  { %v151_v12 = vmul.f32 0.044715, %v149_v11 }
 0x193   :  { %v144_v13 = vpop.f32.mrf.mxu0 }
 0x194   :  { %v145_v14 = vadd.f32 %v237_v7, %v144_v13  ;;  %v153_v15 = vadd.f32 %v151_v12, %v142_v9 }
 0x196   :  { %v148_v16 = vmul.f32 %v145_v14, %v145_v14  ;;  %v155_v17 = vmul.f32 0.7978846, %v153_v15 }
 0x198   :  { %v150_v18 = vmul.f32 %v148_v16, %v145_v14  ;;  %245 = vtanh.f32 %v155_v17 }
 0x19a   :  { %v152_v19 = vmul.f32 0.044715, %v150_v18 }
 0x19c   :  { %v154_v20 = vadd.f32 %v152_v19, %v145_v14 }
 0x19e   :  { %v246_v21 = vpop.eup %245  ;;  %v156_v22 = vmul.f32 0.7978846, %v154_v20 }
 0x19f   :  { %v159_v23 = vadd.f32 1.0, %v246_v21 }
 0x1a0   :  { %247 = vtanh.f32 %v156_v22 }
 0x1a1   :  { %v161_v24 = vmul.f32 0.5, %v159_v23 }
 0x1a3   :  { %v163_v25 = vmul.f32 %v161_v24, %v142_v9 }
 0x1a5   :  { %184 = vmatmul.f32.vlgmr.msra.gmra.mxu1 %v163_v25 }
 0x1a6   :  { %v248_v26 = vpop.eup %247 }
 0x1a7   :  { %v160_v27 = vadd.f32 1.0, %v248_v26 }
 0x1a9   :  { %v162_v28 = vmul.f32 0.5, %v160_v27 }
 0x1ab   :  { %v164_v29 = vmul.f32 %v162_v28, %v145_v14 }
 0x1ad   :  { %187 = vmatmul.f32.vlgmr.msra.gmra.mxu2 %v164_v29 }
 0x222   :  { %v185_v31 = vpop.f32.mrf.mxu1 }
 0x223   :  { %v186_v32 = vadd.f32 %v238_v30, %v185_v31 }
 0x225   :  { %v191_v33 = vadd.f32 %v186_v32, %v322_v0 }
 0x227   :  { %193 = vst.msk [vmem:[#allocation2] sm:$0xff] %vm53_vm0, %v191_v33 }
 0x230   :  { %v188_v34 = vpop.f32.mrf.mxu2 }
 0x231   :  { %v189_v35 = vadd.f32 %v238_v30, %v188_v34 }
 0x233   :  { %v192_v36 = vadd.f32 %v189_v35, %v329_v2 }
 0x235   :  { %194 = vst.msk [vmem:[#allocation2 + $0x8] sm:$0xff] %vm53_vm0, %v192_v36 }
 0x236   :  { %207 = dma.vmem_to_hbm [thread:$0]  %s200_s2, 256, %s202_s24, [#allocation3], %s277_s6, %s277_s6, %s278_s25  }
 0x237   :  { %273 = dma.done.wait [#allocation3], 256  }
 0x238   :  { %274 = vsyncadd [#allocation3], 4294967040 }
 0x239   :  { %212 = vsyncpa [#allocation3], 1 }

</bundles_post_ra>
